<compile_context>
chip_gen: v7x
topology: tpu7x:2x2x1
jax: 0.10.0
libtpu: 0.0.40
codegen_flags: <defaults>
</compile_context>

<pallas_src>
import jax
import jax.numpy as jnp
from jax.experimental import pallas as pl
from jax.experimental.pallas import tpu as pltpu


def _copy_kernel(x_ref, o_ref):
    # Pure identity copy of one lane-dense VMEM tile.
    o_ref[...] = x_ref[...]


def _sublane_packing(dtype) -> int:
    """Rows per packed vreg for this dtype (8 f32, 16 bf16, 32 int8/fp8)."""
    itemsize = jnp.dtype(dtype).itemsize
    if itemsize >= 4:
        return 8
    if itemsize == 2:
        return 16
    return 32


def _vmem_capacity_bytes() -> int:
    """Per-core VMEM capacity; conservative fallback if the query fails."""
    try:
        return int(pltpu.get_tpu_info().vmem_capacity_bytes)
    except Exception:
        return 64 * 1024 * 1024  # v7x-safe lower bound


def _flatten_copy(x2: jax.Array, target_block_bytes: int) -> jax.Array:
    """Materializing (B, flat) identity copy via a pipelined Pallas kernel."""
    B, flat = x2.shape
    dtype = x2.dtype
    itemsize = jnp.dtype(dtype).itemsize
    total = B * flat
    sub = _sublane_packing(dtype)

    vmem_cap = _vmem_capacity_bytes()
    # input + output, each double-buffered -> ~4 block copies resident.
    max_block_bytes = max(128 * 128 * itemsize, (vmem_cap * 3 // 4) // 4)
    block_budget = min(target_block_bytes, max_block_bytes)

    cost = pl.CostEstimate(flops=0, transcendentals=0,
                           bytes_accessed=2 * total * itemsize)

    # Lane-dense column width: a large multiple of 128 dividing the element
    # count, so every store is a full-lane unmasked vst.
    cols = 0
    for c in (4096, 2048, 1024, 512, 256, 128):
        if total % c == 0:
            cols = c
            break

    if cols == 0:
        # Fallback: element count not a multiple of 128.  Tile over the batch
        # dim with the full (unpadded) last dim -- always a legal block -- so
        # the copy stays pipelined instead of one giant VMEM block.
        row_bytes = flat * itemsize
        tile_b = max(1, block_budget // row_bytes)
        if tile_b < B:
            tile_b = max(sub, (tile_b // sub) * sub)
        tile_b = min(tile_b, B)
        if tile_b < B and tile_b % 8 != 0:
            tile_b = B  # tiny batches: single block over the full extents
        grid_b = pl.cdiv(B, tile_b)
        block_bytes = tile_b * flat * itemsize
        vmem_limit = int(min(vmem_cap, max(32 << 20, 4 * block_bytes + (8 << 20))))
        return pl.pallas_call(
            _copy_kernel,
            out_shape=jax.ShapeDtypeStruct((B, flat), dtype),
            grid=(grid_b,),
            in_specs=[pl.BlockSpec((tile_b, flat), lambda i: (i, 0))],
            out_specs=pl.BlockSpec((tile_b, flat), lambda i: (i, 0)),
            compiler_params=pltpu.CompilerParams(
                dimension_semantics=("parallel",),
                vmem_limit_bytes=vmem_limit),
            cost_estimate=cost,
        )(x2)

    rows = total // cols
    slab = jnp.reshape(x2, (rows, cols))  # free metadata reshape

    max_rows_per_block = max(1, block_budget // (cols * itemsize))
    if max_rows_per_block >= rows:
        tile_r = rows
    else:
        tile_r = max(sub, (max_rows_per_block // sub) * sub)
        tile_r = min(tile_r, rows)
        if tile_r < rows and tile_r % 8 != 0:
            tile_r = rows  # keep the block legal under the (8,128) rule
    grid_r = pl.cdiv(rows, tile_r)

    block_bytes = tile_r * cols * itemsize
    vmem_limit = int(min(vmem_cap, max(32 << 20, 4 * block_bytes + (8 << 20))))

    out_slab = pl.pallas_call(
        _copy_kernel,
        out_shape=jax.ShapeDtypeStruct((rows, cols), dtype),
        grid=(grid_r,),
        in_specs=[pl.BlockSpec((tile_r, cols), lambda i: (i, 0))],
        out_specs=pl.BlockSpec((tile_r, cols), lambda i: (i, 0)),
        compiler_params=pltpu.CompilerParams(
            dimension_semantics=("parallel",),
            vmem_limit_bytes=vmem_limit),
        cost_estimate=cost,
    )(slab)

    return jnp.reshape(out_slab, (B, flat))


def flatten(x: jax.Array, *, materialize_copy: bool = False,
            target_block_bytes: int = 8 * 1024 * 1024) -> jax.Array:
    """Pallas equivalent of torch `x.view(x.size(0), -1)`.

    Default path: metadata-only reshape (what torch .view does on a
    contiguous tensor) -- zero HBM traffic.  Set `materialize_copy=True` to
    force a physical copy through the pipelined Pallas identity kernel.
    """
    B = x.shape[0]
    flat = 1
    for d in x.shape[1:]:
        flat *= d
    x2 = jnp.reshape(x, (B, flat))  # free for contiguous (row-major) inputs
    if not materialize_copy:
        return x2
    return _flatten_copy(x2, target_block_bytes)


if __name__ == "__main__":
    key = jax.random.PRNGKey(0)
    # Small NCHW feature map consistent with the module's typical usage.
    x = jax.random.normal(key, (2, 4, 16, 16), dtype=jnp.float32)
    ref = x.reshape(x.shape[0], -1)

    # Default path: free, metadata-only flatten (no Pallas call, no HBM copy).
    out = flatten(x)
    jax.block_until_ready(out)
    assert out.shape == (2, 4 * 16 * 16), out.shape
    assert out.dtype == x.dtype
    assert jnp.array_equal(out, ref), "flatten (reshape path) mismatch"

    # Explicit-materialization path: exercises the Pallas copy kernel
    # (lane-dense slab, pipelined row grid, parallel axis).
    out_copy = flatten(x, materialize_copy=True)
    jax.block_until_ready(out_copy)
    assert jnp.array_equal(out_copy, ref), "flatten (Pallas copy) mismatch"

    # Fallback path: element count not a multiple of 128 -> tiled over batch.
    x_odd = jax.random.normal(jax.random.PRNGKey(1), (2, 3, 5, 7),
                              dtype=jnp.float32)
    out_odd = flatten(x_odd, materialize_copy=True)
    jax.block_until_ready(out_odd)
    assert jnp.array_equal(out_odd, x_odd.reshape(2, -1)), \
        "flatten (fallback path) mismatch"

    print("KERNEL_OK")
</pallas_src>

<mosaic_0001>
module attributes {stable_mosaic.version = 11 : i64} {
  func.func @_copy_kernel(%arg0: i32, %arg1: memref<1x2048xf32, #tpu.memory_space<vmem>>, %arg2: memref<1x2048xf32, #tpu.memory_space<vmem>>) attributes {dimension_semantics = [#tpu.dimension_semantics<parallel>], iteration_bounds = array<i64: 1>, scalar_prefetch = 0 : i64, scratch_operands = 0 : i64, tpu.core_type = #tpu.core_type<tc>, window_params = [{transform_indices = @transform_0, window_bounds = array<i64: 1, 2048>}, {transform_indices = @transform_1, window_bounds = array<i64: 1, 2048>}]} {
    %c0 = arith.constant 0 : index
    %c0_0 = arith.constant 0 : index
    %0 = vector.load %arg1[%c0, %c0_0] : memref<1x2048xf32, #tpu.memory_space<vmem>>, vector<1x2048xf32>
    %c0_1 = arith.constant 0 : index
    %c0_2 = arith.constant 0 : index
    %1 = vector.load %arg2[%c0_1, %c0_2] : memref<1x2048xf32, #tpu.memory_space<vmem>>, vector<1x2048xf32>
    tpu.vector_store %arg2[%c0_1, %c0_2], %0 {strides = array<i32>} : memref<1x2048xf32, #tpu.memory_space<vmem>>, vector<1x2048xf32>,
    return
  }
  func.func @transform_0(%arg0: i32) -> (i32, i32) {
    %c0_i32 = arith.constant 0 : i32
    %c0_i32_0 = arith.constant 0 : i32
    return %arg0, %c0_i32 : i32, i32
  }
  func.func @transform_1(%arg0: i32) -> (i32, i32) {
    %c0_i32 = arith.constant 0 : i32
    %c0_i32_0 = arith.constant 0 : i32
    return %arg0, %c0_i32 : i32, i32
  }
}

</mosaic_0001>

<bundles_post_ra>
// kernel: tpu_custom_call.1
= control target key start
LH: loop header
LB: loop body
LE: loop exit
PB: predicated region body
PF: predicated region fallthrough
CT: control target
= control target key end

     0   :  { %6 = vsyncpa [#allocation3], 0  ;;  %s126_s0 = inlined_call_operand.hbm [shape: f32[1,2048], index: 0, kind: input, shape index: {}]   ;;  %s127_s1 = inlined_call_operand.hbm [shape: f32[1,2048], index: 1, kind: output, shape index: {}]  }
   0x1   :  { %7 = vsyncpa [#allocation4], 0  ;;  %s90_s6 = smov [#allocation2]   ;;  %s42_s10 = scalar_lea.hbm %s126_s0, 256 }
   0x2   :  { %s14_s7 = sshll.u32 %s90_s6, 4  ;;  %p43_p0 = scmp.ne.s32.totalorder %s126_s0, %s42_s10  ;;  %s15_s7 = int_to_ptr.vmem [resolvable:$true] %s14_s7 }
   0x3   :  { %p46_p1 = scmp.lt.u32.totalorder %s42_s10, %s126_s0 }
   0x5   :  { %p48_p2 = pnand %p46_p1, %p43_p0 }
   0x7   :  { %51 = shalt.err (!%p48_p2)
}
   0x8   :  { %s52_s15 = scalar_lea.vmem %s15_s7, 256  ;;  %p57_p4 = scmp.lt.s32.totalorder %s15_s7, %s15_s7 }
   0x9   :  { %p53_p3 = scmp.ne.s32.totalorder %s15_s7, %s52_s15  ;;  %p58_p5 = scmp.lt.s32.totalorder %s52_s15, %s52_s15 }
   0xb   :  { %p59_p6 = por %p58_p5, %p57_p4 }
   0xd   :  { %p60_p7 = pnand %p59_p6, %p53_p3 }
   0xf   :  { %63 = shalt.err (!%p60_p7)
}
  0x10   :  { %17 = dma.hbm_to_vmem [thread:$0]  %s126_s0, 256, %s15_s7, [#allocation3]  }
  0x11   :  { %86 = dma.done.wait [#allocation3], 256  }
  0x12   :  { %87 = vsyncadd [#allocation3], 4294967040  ;;  %s91_s18 = smov [#allocation5]   ;;  %v21_v0 = vld [vmem:[#allocation2] sm:$0xff]  ;;  %v22_v1 = vld [vmem:[#allocation2 + $0x8] sm:$0xff] }
  0x13   :  { %s31_s19 = sshll.u32 %s91_s18, 4  ;;  %23 = vst [vmem:[#allocation5] sm:$0xff] %v21_v0  ;;  %24 = vst [vmem:[#allocation5 + $0x8] sm:$0xff] %v22_v1  ;;  %s32_s19 = int_to_ptr.vmem [resolvable:$true] %s31_s19 }
  0x14   :  { %s64_s20 = scalar_lea.vmem %s32_s19, 256  ;;  %p69_p9 = scmp.lt.s32.totalorder %s32_s19, %s32_s19 }
  0x15   :  { %p65_p8 = scmp.ne.s32.totalorder %s32_s19, %s64_s20  ;;  %p70_p10 = scmp.lt.s32.totalorder %s64_s20, %s64_s20 }
  0x17   :  { %p71_p11 = por %p70_p10, %p69_p9 }
  0x19   :  { %p72_p12 = pnand %p71_p11, %p65_p8 }
  0x1b   :  { %75 = shalt.err (!%p72_p12)
}
  0x1c   :  { %s76_s0 = scalar_lea.hbm %s127_s1, 256 }
  0x1d   :  { %p77_p13 = scmp.ne.s32.totalorder %s127_s1, %s76_s0  ;;  %p80_p0 = scmp.lt.u32.totalorder %s76_s0, %s127_s1 }
  0x1f   :  { %p82_p1 = pnand %p80_p0, %p77_p13 }
  0x21   :  { %85 = shalt.err (!%p82_p1)
}
  0x22   :  { %34 = dma.vmem_to_hbm [thread:$0]  %s32_s19, 256, %s127_s1, [#allocation4]  }
  0x23   :  { %88 = dma.done.wait [#allocation4], 256  }
  0x24   :  { %89 = vsyncadd [#allocation4], 4294967040 }
  0x25   :  { %38 = vsyncpa [#allocation3], 1 }
  0x26   :  { %39 = vsyncpa [#allocation4], 1 }

</bundles_post_ra>
